<compile_context>
chip_gen: v6e
topology: v6e:2x2x1
jax: 0.10.0
libtpu: 0.0.40
codegen_flags: <defaults>
</compile_context>

<pallas_src>
import functools

import jax
import jax.numpy as jnp
from jax.experimental import pallas as pl
from jax.experimental.pallas import tpu as pltpu

# Physical constants from TrajectoryLoss.__init__ (no learnable parameters).
MC, MP = 0.2, 0.5
L, G = 0.5, 9.80364


def _traj_loss_kernel(xu_ref, out_ref, acc_ref, *, inv_n: float):
    # xu_ref : (1, 5, block_rows, 128) f32 VMEM block
    #          features: [pos, theta, x_dot, theta_dot, u], steps on (rows, lanes)
    # out_ref: (1, 8, 128) f32 VMEM block -- per-trajectory mean loss, broadcast
    # acc_ref: (block_rows, 128) f32 VMEM scratch -- partial sums (per core)
    r = pl.program_id(1)

    @pl.when(r == 0)
    def _():
        acc_ref[...] = jnp.zeros_like(acc_ref)

    pos = xu_ref[0, 0]          # (block_rows, 128) cart position
    th = xu_ref[0, 1]           # pole angle
    vel = xu_ref[0, 2]          # cart velocity
    om = xu_ref[0, 3]           # pole angular velocity
    u = xu_ref[0, 4]            # control
    cth = jnp.cos(th)

    per_step = (
        0.05 * (pos * pos)
        + (MP * G * L) * (1.0 - cth)
        + (0.5 * (MC + MP)) * (vel * vel)
        + (MP * L) * (vel * om) * cth
        + (0.5 * MP * L * L) * (om * om)
        + 0.1 * (u * u)
    )                           # (block_rows, 128); zero-padded steps contribute 0

    # Steady state: pure full-vreg adds into the VMEM accumulator (no XLU,
    # no scalar read-modify-write on the critical path).
    acc_ref[...] += per_step

    @pl.when(r == pl.num_programs(1) - 1)
    def _():
        # One cross-lane/sublane reduce + divide-by-true-N per trajectory.
        total = jnp.sum(acc_ref[...]) * inv_n
        out_ref[...] = total + jnp.zeros(out_ref.shape, out_ref.dtype)


def trajectory_loss_batched(inputs: jax.Array, ctrl: jax.Array,
                            *, max_block_rows: int = 512) -> jax.Array:
    """Batched TrajectoryLoss: inputs (B, N, 4), ctrl (B, N, 1) -> (B,) losses."""
    inputs = inputs.astype(jnp.float32)
    ctrl = ctrl.astype(jnp.float32)
    b, n, _ = inputs.shape

    # Tile the N trajectory steps as (rows, 128 lanes).
    rows = (n + 127) // 128
    if rows <= max_block_rows:
        block_rows = ((rows + 7) // 8) * 8          # single block, sublane-aligned
    else:
        block_rows = max_block_rows                 # multiple of 8 (512 by default)
    rows_pad = ((rows + block_rows - 1) // block_rows) * block_rows
    num_blocks = rows_pad // block_rows
    n_pad = rows_pad * 128

    # Per-feature dense packing: (B, 5, rows_pad, 128). Zero padding contributes
    # exactly 0 to the cost (1 - cos(0) = 0; all other terms quadratic/products).
    feats = jnp.concatenate([inputs, ctrl], axis=-1)            # (B, N, 5)
    feats = jnp.swapaxes(feats, 1, 2)                           # (B, 5, N)
    feats = jnp.pad(feats, ((0, 0), (0, 0), (0, n_pad - n)))    # (B, 5, n_pad)
    packed = feats.reshape(b, 5, rows_pad, 128)

    out = pl.pallas_call(
        functools.partial(_traj_loss_kernel, inv_n=1.0 / float(n)),
        out_shape=jax.ShapeDtypeStruct((b, 8, 128), jnp.float32),
        grid=(b, num_blocks),
        in_specs=[
            pl.BlockSpec((1, 5, block_rows, 128), lambda bi, ri: (bi, 0, ri, 0)),
        ],
        out_specs=pl.BlockSpec((1, 8, 128), lambda bi, ri: (bi, 0, 0)),
        scratch_shapes=[pltpu.VMEM((block_rows, 128), jnp.float32)],
        compiler_params=pltpu.CompilerParams(
            # Batch axis parallel (v7x 2-TC), reduction axis sequential.
            dimension_semantics=("parallel", "arbitrary"),
        ),
    )(packed)
    # Mean loss was broadcast over the (8, 128) output block; take one element.
    return out[:, 0, 0]


def trajectory_loss(inputs: jax.Array, ctrl: jax.Array,
                    *, max_block_rows: int = 512) -> jax.Array:
    """Pallas TPU implementation of TrajectoryLoss.forward. Returns a scalar."""
    return trajectory_loss_batched(inputs[None], ctrl[None],
                                   max_block_rows=max_block_rows)[0]


def _reference_loss(inputs, ctrl):
    pos, th, vel, om = inputs[:, 0], inputs[:, 1], inputs[:, 2], inputs[:, 3]
    u = ctrl[:, 0]
    per = (
        0.05 * pos**2
        + MP * G * L * (1.0 - jnp.cos(th))
        + 0.5 * (MC + MP) * vel**2
        + MP * L * vel * om * jnp.cos(th)
        + 0.5 * MP * L * L * om**2
        + 0.1 * u**2
    )
    return jnp.mean(per)


if __name__ == "__main__":
    key = jax.random.PRNGKey(0)
    k1, k2, k3, k4, k5, k6 = jax.random.split(key, 6)

    # 1) Small single trajectory (typical module use): N = 8.
    N = 8
    inputs = jax.random.normal(k1, (N, 4), dtype=jnp.float32)
    ctrl = jax.random.normal(k2, (N, 1), dtype=jnp.float32)
    loss = trajectory_loss(inputs, ctrl)
    jax.block_until_ready(loss)
    ref = _reference_loss(inputs, ctrl)
    assert jnp.allclose(loss, ref, rtol=1e-5, atol=1e-5), (loss, ref)

    # 2) Longer trajectory with a deliberately tiny block size to exercise the
    #    multi-block grid + persistent VMEM accumulator path.
    N2 = 2000
    inputs2 = jax.random.normal(k3, (N2, 4), dtype=jnp.float32)
    ctrl2 = jax.random.normal(k4, (N2, 1), dtype=jnp.float32)
    loss2 = trajectory_loss(inputs2, ctrl2, max_block_rows=8)
    jax.block_until_ready(loss2)
    ref2 = _reference_loss(inputs2, ctrl2)
    assert jnp.allclose(loss2, ref2, rtol=1e-5, atol=1e-5), (loss2, ref2)

    # 3) Batched trajectories in a single pallas_call (parallel batch axis).
    B, N3 = 3, 50
    inputs3 = jax.random.normal(k5, (B, N3, 4), dtype=jnp.float32)
    ctrl3 = jax.random.normal(k6, (B, N3, 1), dtype=jnp.float32)
    losses3 = trajectory_loss_batched(inputs3, ctrl3)
    jax.block_until_ready(losses3)
    refs3 = jnp.stack([_reference_loss(inputs3[i], ctrl3[i]) for i in range(B)])
    assert jnp.allclose(losses3, refs3, rtol=1e-5, atol=1e-5), (losses3, refs3)

    print("KERNEL_OK")
</pallas_src>

<mosaic_0001>
module attributes {stable_mosaic.version = 11 : i64} {
  func.func @_traj_loss_kernel(%arg0: i32, %arg1: i32, %arg2: memref<1x5x8x128xf32, #tpu.memory_space<vmem>>, %arg3: memref<1x8x128xf32, #tpu.memory_space<vmem>>, %arg4: memref<8x128xf32, #tpu.memory_space<vmem>>) attributes {dimension_semantics = [#tpu.dimension_semantics<parallel>, #tpu.dimension_semantics<arbitrary>], iteration_bounds = array<i64: 1, 1>, scalar_prefetch = 0 : i64, scratch_operands = 1 : i64, tpu.core_type = #tpu.core_type<tc>, window_params = [{transform_indices = @transform_0, window_bounds = array<i64: 1, 5, 8, 128>}, {transform_indices = @transform_1, window_bounds = array<i64: 1, 8, 128>}]} {
    %c0_i32 = arith.constant 0 : i32
    %0 = arith.cmpi eq, %arg1, %c0_i32 : i32
    %1 = arith.extui %0 : i1 to i32
    %c0_i32_0 = arith.constant 0 : i32
    %2 = arith.cmpi ne, %1, %c0_i32_0 : i32
    scf.if %2 {
      %cst_28 = arith.constant 0.000000e+00 : f32
      %45 = vector.broadcast %cst_28 : f32 to vector<8x128xf32>
      %c0_29 = arith.constant 0 : index
      %c0_30 = arith.constant 0 : index
      %46 = vector.load %arg4[%c0_29, %c0_30] : memref<8x128xf32, #tpu.memory_space<vmem>>, vector<8x128xf32>
      tpu.vector_store %arg4[%c0_29, %c0_30], %45 {strides = array<i32>} : memref<8x128xf32, #tpu.memory_space<vmem>>, vector<8x128xf32>,
    } else {
    }
    %c0 = arith.constant 0 : index
    %c0_1 = arith.constant 0 : index
    %c0_2 = arith.constant 0 : index
    %c0_3 = arith.constant 0 : index
    %3 = vector.load %arg2[%c0, %c0_1, %c0_2, %c0_3] : memref<1x5x8x128xf32, #tpu.memory_space<vmem>>, vector<1x1x8x128xf32>
    %4 = vector.shape_cast %3 : vector<1x1x8x128xf32> to vector<8x128xf32>
    %c0_4 = arith.constant 0 : index
    %c1 = arith.constant 1 : index
    %c0_5 = arith.constant 0 : index
    %c0_6 = arith.constant 0 : index
    %5 = vector.load %arg2[%c0_4, %c1, %c0_5, %c0_6] : memref<1x5x8x128xf32, #tpu.memory_space<vmem>>, vector<1x1x8x128xf32>
    %6 = vector.shape_cast %5 : vector<1x1x8x128xf32> to vector<8x128xf32>
    %c0_7 = arith.constant 0 : index
    %c2 = arith.constant 2 : index
    %c0_8 = arith.constant 0 : index
    %c0_9 = arith.constant 0 : index
    %7 = vector.load %arg2[%c0_7, %c2, %c0_8, %c0_9] : memref<1x5x8x128xf32, #tpu.memory_space<vmem>>, vector<1x1x8x128xf32>
    %8 = vector.shape_cast %7 : vector<1x1x8x128xf32> to vector<8x128xf32>
    %c0_10 = arith.constant 0 : index
    %c3 = arith.constant 3 : index
    %c0_11 = arith.constant 0 : index
    %c0_12 = arith.constant 0 : index
    %9 = vector.load %arg2[%c0_10, %c3, %c0_11, %c0_12] : memref<1x5x8x128xf32, #tpu.memory_space<vmem>>, vector<1x1x8x128xf32>
    %10 = vector.shape_cast %9 : vector<1x1x8x128xf32> to vector<8x128xf32>
    %c0_13 = arith.constant 0 : index
    %c4 = arith.constant 4 : index
    %c0_14 = arith.constant 0 : index
    %c0_15 = arith.constant 0 : index
    %11 = vector.load %arg2[%c0_13, %c4, %c0_14, %c0_15] : memref<1x5x8x128xf32, #tpu.memory_space<vmem>>, vector<1x1x8x128xf32>
    %12 = vector.shape_cast %11 : vector<1x1x8x128xf32> to vector<8x128xf32>
    %13 = math.cos %6 : vector<8x128xf32>
    %14 = arith.mulf %4, %4 : vector<8x128xf32>
    %cst = arith.constant 5.000000e-02 : f32
    %15 = vector.broadcast %cst : f32 to vector<8x128xf32>
    %16 = arith.mulf %15, %14 : vector<8x128xf32>
    %cst_16 = arith.constant 1.000000e+00 : f32
    %17 = vector.broadcast %cst_16 : f32 to vector<8x128xf32>
    %18 = arith.subf %17, %13 : vector<8x128xf32>
    %cst_17 = arith.constant 2.450910e+00 : f32
    %19 = vector.broadcast %cst_17 : f32 to vector<8x128xf32>
    %20 = arith.mulf %19, %18 : vector<8x128xf32>
    %21 = arith.addf %16, %20 : vector<8x128xf32>
    %22 = arith.mulf %8, %8 : vector<8x128xf32>
    %cst_18 = arith.constant 3.500000e-01 : f32
    %23 = vector.broadcast %cst_18 : f32 to vector<8x128xf32>
    %24 = arith.mulf %23, %22 : vector<8x128xf32>
    %25 = arith.addf %21, %24 : vector<8x128xf32>
    %26 = arith.mulf %8, %10 : vector<8x128xf32>
    %cst_19 = arith.constant 2.500000e-01 : f32
    %27 = vector.broadcast %cst_19 : f32 to vector<8x128xf32>
    %28 = arith.mulf %27, %26 : vector<8x128xf32>
    %29 = arith.mulf %28, %13 : vector<8x128xf32>
    %30 = arith.addf %25, %29 : vector<8x128xf32>
    %31 = arith.mulf %10, %10 : vector<8x128xf32>
    %cst_20 = arith.constant 6.250000e-02 : f32
    %32 = vector.broadcast %cst_20 : f32 to vector<8x128xf32>
    %33 = arith.mulf %32, %31 : vector<8x128xf32>
    %34 = arith.addf %30, %33 : vector<8x128xf32>
    %35 = arith.mulf %12, %12 : vector<8x128xf32>
    %cst_21 = arith.constant 1.000000e-01 : f32
    %36 = vector.broadcast %cst_21 : f32 to vector<8x128xf32>
    %37 = arith.mulf %36, %35 : vector<8x128xf32>
    %38 = arith.addf %34, %37 : vector<8x128xf32>
    %c0_22 = arith.constant 0 : index
    %c0_23 = arith.constant 0 : index
    %39 = vector.load %arg4[%c0_22, %c0_23] : memref<8x128xf32, #tpu.memory_space<vmem>>, vector<8x128xf32>
    %40 = arith.addf %39, %38 : vector<8x128xf32>
    %c0_24 = arith.constant 0 : index
    %c0_25 = arith.constant 0 : index
    %41 = vector.load %arg4[%c0_24, %c0_25] : memref<8x128xf32, #tpu.memory_space<vmem>>, vector<8x128xf32>
    tpu.vector_store %arg4[%c0_24, %c0_25], %40 {strides = array<i32>} : memref<8x128xf32, #tpu.memory_space<vmem>>, vector<8x128xf32>,
    %c0_i32_26 = arith.constant 0 : i32
    %42 = arith.cmpi eq, %arg1, %c0_i32_26 : i32
    %43 = arith.extui %42 : i1 to i32
    %c0_i32_27 = arith.constant 0 : i32
    %44 = arith.cmpi ne, %43, %c0_i32_27 : i32
    scf.if %44 {
      %c0_28 = arith.constant 0 : index
      %c0_29 = arith.constant 0 : index
      %45 = vector.load %arg4[%c0_28, %c0_29] : memref<8x128xf32, #tpu.memory_space<vmem>>, vector<8x128xf32>
      %46 = vector.shape_cast %45 : vector<8x128xf32> to vector<1x8x128xf32>
      %cst_30 = arith.constant dense<0.000000e+00> : vector<1xf32>
      %47 = vector.multi_reduction <add>, %46, %cst_30 [1, 2] : vector<1x8x128xf32> to vector<1xf32>
      %48 = vector.shape_cast %47 : vector<1xf32> to vector<1x1x1xf32>
      %49 = vector.extract %48[0, 0, 0] : f32 from vector<1x1x1xf32>
      %cst_31 = arith.constant 1.250000e-01 : f32
      %50 = arith.mulf %49, %cst_31 : f32
      %cst_32 = arith.constant 0.000000e+00 : f32
      %51 = vector.broadcast %cst_32 : f32 to vector<1x8x128xf32>
      %52 = vector.broadcast %50 : f32 to vector<1x8x128xf32>
      %53 = arith.addf %52, %51 : vector<1x8x128xf32>
      %c0_33 = arith.constant 0 : index
      %c0_34 = arith.constant 0 : index
      %c0_35 = arith.constant 0 : index
      %54 = vector.load %arg3[%c0_33, %c0_34, %c0_35] : memref<1x8x128xf32, #tpu.memory_space<vmem>>, vector<1x8x128xf32>
      tpu.vector_store %arg3[%c0_33, %c0_34, %c0_35], %53 {strides = array<i32>} : memref<1x8x128xf32, #tpu.memory_space<vmem>>, vector<1x8x128xf32>,
    } else {
    }
    return
  }
  func.func @transform_0(%arg0: i32, %arg1: i32) -> (i32, i32, i32, i32) {
    %c0_i32 = arith.constant 0 : i32
    %c0_i32_0 = arith.constant 0 : i32
    %c0_i32_1 = arith.constant 0 : i32
    return %arg0, %c0_i32, %arg1, %c0_i32_0 : i32, i32, i32, i32
  }
  func.func @transform_1(%arg0: i32, %arg1: i32) -> (i32, i32, i32) {
    %c0_i32 = arith.constant 0 : i32
    %c0_i32_0 = arith.constant 0 : i32
    %c0_i32_1 = arith.constant 0 : i32
    return %arg0, %c0_i32, %c0_i32_0 : i32, i32, i32
  }
}

</mosaic_0001>

<bundles_post_ra>
// kernel: tpu_custom_call.1
= control target key start
LH: loop header
LB: loop body
LE: loop exit
PB: predicated region body
PF: predicated region fallthrough
CT: control target
= control target key end

     0   :  { %6 = vsyncpa [#allocation4], 0  ;;  %s308_s0 = inlined_call_operand.hbm [shape: f32[1,5,8,128], index: 0, kind: input, shape index: {}]   ;;  %s309_s1 = inlined_call_operand.hbm [shape: f32[1,8,128], index: 1, kind: output, shape index: {}]  }
   0x1   :  { %7 = vsyncpa [#allocation5], 0  ;;  %s261_s6 = smov [#allocation3]  }
   0x2   :  { %s13_s7 = sshll.u32 %s261_s6, 4  ;;  %s14_s7 = int_to_ptr.vmem [resolvable:$true] %s13_s7 }
   0x3   :  { %s225_s8 = scalar_lea.vmem %s14_s7, 640  ;;  %p230_p1 = scmp.lt.s32.totalorder %s14_s7, %s14_s7 }
   0x4   :  { %p226_p0 = scmp.ne.s32.totalorder %s14_s7, %s225_s8  ;;  %p231_p2 = scmp.lt.s32.totalorder %s225_s8, %s225_s8 }
   0x6   :  { %p232_p3 = por %p231_p2, %p230_p1 }
   0x8   :  { %p233_p4 = pnand %p232_p3, %p226_p0 }
   0xa   :  { %236 = shalt.err (!%p233_p4)
}
   0xb   :  { %s262_s9 = smov 128   ;;  %s263_s10 = smov 8  }
   0xc   :  { %19 = dma.hbm_to_vmem [thread:$0]  %s308_s0, 640, %s14_s7, [#allocation4], %s262_s9, %s262_s9, %s263_s10  }
   0xd   :  { %257 = dma.done.wait [#allocation4], 640  }
   0xe   :  { %258 = vsyncadd [#allocation4], 4294966656  ;;  %v284_v0 = vld [vmem:[#allocation3 + $0x8] sm:$0xff]  ;;  %v264_v12 = vmov 683565275   ;;  %s270_s0 = smov [#allocation6]  }
   0xf   :  { %v40_v1 = vand.u32 2139095040, %v284_v0  ;;  %v37_v3 = vand.u32 2147483647, %v284_v0  ;;  %v265_v14 = vmov 2475754826   ;;  %vm39_vm7 = vcmp.lt.s32.totalorder %v284_v0, 0 }
  0x10   :  { %v266_v16 = vmov 2131351028   ;;  %v267_v18 = vmov 2102212464   ;;  %v268_v20 = vmov 920167782   ;;  %vm129_vm12 = vweird.f32 %v284_v0 }
  0x11   :  { %v41_v2 = vshrl.u32 %v40_v1, 23  ;;  %v44_v6 = vand.u32 8388607, %v37_v3  ;;  %v269_v27 = vmov 1326507024   ;;  %s184_s13 = sshll.u32 %s270_s0, 4  ;;  %s185_s13 = int_to_ptr.vmem [resolvable:$true] %s184_s13 }
  0x12   :  { %vm38_vm8 = vcmp.le.f32.partialorder %v37_v3, 0.7853982  ;;  %s237_s16 = scalar_lea.vmem %s185_s13, 128  ;;  %p242_p6 = scmp.lt.s32.totalorder %s185_s13, %s185_s13 }
  0x13   :  { %v193_v4 = vadd.s32 4294967169, %v41_v2  ;;  %v45_v9 = vor.u32 8388608, %v44_v6  ;;  %p238_p5 = scmp.ne.s32.totalorder %s185_s13, %s237_s16  ;;  %p243_p7 = scmp.lt.s32.totalorder %s237_s16, %s237_s16 }
  0x15   :  { %v47_v5 = vadd.s32 1, %v193_v4  ;;  %v85_v29 = vshll.u32 %v45_v9, 8  ;;  %p244_p8 = por %p243_p7, %p242_p6 }
  0x17   :  { %vm48_vm0 = vcmp.gt.s32.totalorder %v47_v5, 0  ;;  %p245_p9 = pnand %p244_p8, %p238_p5 }
  0x18   :  { %v49_v7 = vsel %vm48_vm0, %v47_v5, 0 }
  0x19   :  { %v51_v8 = vand.u32 31, %v49_v7  ;;  %v50_v10 = vshrl.u32 %v49_v7, 5 }
  0x1b   :  { %v52_v11 = vsub.s32 32, %v51_v8  ;;  %v54_v13 = vshll.u32 %v264_v12, %v51_v8  ;;  %v57_v15 = vshll.u32 %v265_v14, %v51_v8  ;;  %v60_v17 = vshll.u32 %v266_v16, %v51_v8 }
  0x1c   :  { %v63_v19 = vshll.u32 %v267_v18, %v51_v8  ;;  %v66_v21 = vshll.u32 %v268_v20, %v51_v8  ;;  %vm69_vm1 = vcmp.lt.s32.totalorder %v50_v10, 1  ;;  %vm72_vm2 = vcmp.lt.s32.totalorder %v50_v10, 4 }
  0x1d   :  { %v53_v22 = vshrl.u32 %v264_v12, %v52_v11  ;;  %v55_v23 = vshrl.u32 %v265_v14, %v52_v11  ;;  %v58_v24 = vshrl.u32 %v266_v16, %v52_v11  ;;  %v61_v25 = vshrl.u32 %v267_v18, %v52_v11 }
  0x1e   :  { %v64_v26 = vshrl.u32 %v268_v20, %v52_v11  ;;  %v67_v28 = vshrl.u32 %v269_v27, %v52_v11  ;;  %vm70_vm3 = vcmp.lt.s32.totalorder %v50_v10, 2  ;;  %vm71_vm4 = vcmp.lt.s32.totalorder %v50_v10, 3 }
  0x1f   :  { %v56_v30 = vor.u32 %v55_v23, %v54_v13  ;;  %v59_v31 = vor.u32 %v58_v24, %v57_v15  ;;  %v62_v32 = vor.u32 %v61_v25, %v60_v17  ;;  %v32_v23 = vld [vmem:[#allocation3 + $0x10] sm:$0xff]  ;;  %v34_v24 = vld [vmem:[#allocation3 + $0x18] sm:$0xff] }
  0x20   :  { %v65_v33 = vor.u32 %v64_v26, %v63_v19  ;;  %v68_v34 = vor.u32 %v67_v28, %v66_v21 }
  0x21   :  { %v73_v35 = vsel %vm69_vm1, %v53_v22, %v56_v30  ;;  %v74_v36 = vsel %vm72_vm2, %v62_v32, 2102212464  ;;  %v77_v37 = vsel %vm69_vm1, %v56_v30, %v59_v31  ;;  %v81_v38 = vsel %vm69_vm1, %v59_v31, %v62_v32  ;;  %v28_v22 = vld [vmem:[#allocation3] sm:$0xff] }
  0x22   :  { %v75_v39 = vsel %vm71_vm4, %v59_v31, %v74_v36  ;;  %v78_v40 = vsel %vm72_vm2, %v65_v33, 920167782  ;;  %v82_v41 = vsel %vm72_vm2, %v68_v34, 1326507024  ;;  %v140_v28 = vmul.f32 %v28_v22, %v28_v22 }
  0x23   :  { %v79_v42 = vsel %vm71_vm4, %v62_v32, %v78_v40  ;;  %v83_v43 = vsel %vm71_vm4, %v65_v33, %v82_v41  ;;  %v76_v44 = vsel %vm70_vm3, %v73_v35, %v75_v39  ;;  %v145_v32 = vmul.f32 %v32_v23, %v32_v23 }
  0x24   :  { %v80_v45 = vsel %vm70_vm3, %v77_v37, %v79_v42  ;;  %v84_v46 = vsel %vm70_vm3, %v81_v38, %v83_v43  ;;  %v92_v51 = vmul.u32 %v85_v29, %v76_v44  ;;  %v141_v34 = vmul.f32 0.05, %v140_v28  ;;  %v36_v37 = vld [vmem:[#allocation3 + $0x20] sm:$0xff] }
  0x25   :  { %v290_v47 = vmul.u32.u64.low %v85_v29, %v84_v46  ;;  %v291_v48 = vmul.u32.u64.high %v85_v29, %v84_v46, %v290_v47  ;;  %v293_v49 = vmul.u32.u64.low %v85_v29, %v80_v45  ;;  %v294_v50 = vmul.u32.u64.high %v85_v29, %v80_v45, %v293_v49 }
  0x26   :  { %v148_v29 = vmul.f32 %v34_v24, %v32_v23  ;;  %v146_v39 = vmul.f32 0.35, %v145_v32  ;;  %v152_v40 = vmul.f32 %v34_v24, %v34_v24  ;;  %v155_v43 = vmul.f32 %v36_v37, %v36_v37 }
  0x27   :  { %vm94_vm5 = vc.u32 %v291_v48, %v293_v49  ;;  %v95_v52 = vadd.s32 1, %v294_v50  ;;  %v93_v63 = vadd.s32 %v293_v49, %v291_v48 }
  0x28   :  { %v149_v36 = vmul.f32 0.25, %v148_v29  ;;  %v153_v45 = vmul.f32 0.0625, %v152_v40  ;;  %v156_v46 = vmul.f32 0.1, %v155_v43 }
  0x29   :  { %v96_v53 = vsel %vm94_vm5, %v95_v52, %v294_v50 }
  0x2a   :  { %v97_v54 = vadd.s32 %v96_v53, %v92_v51 }
  0x2c   :  { %v98_v55 = vadd.s32 536870912, %v97_v54 }
  0x2e   :  { %v99_v56 = vshrl.u32 %v98_v55, 30 }
  0x30   :  { %v100_v57 = vshll.u32 %v99_v56, 30  ;;  %v123_v16 = vsub.s32 4, %v99_v56 }
  0x32   :  { %v101_v58 = vsub.s32 %v97_v54, %v100_v57  ;;  %v124_v18 = vsel %vm39_vm7, %v123_v16, %v99_v56 }
  0x33   :  { %v126_v19 = vsel %vm38_vm8, 0, %v124_v18 }
  0x34   :  { %v103_v59 = vsub.s32 0, %v101_v58  ;;  %v130_v20 = vand.u32 3, %v126_v19 }
  0x36   :  { %v194_v60 = vmin.u32 %v103_v59, %v101_v58  ;;  %vm135_vm9 = vcmp.eq.s32.totalorder %v130_v20, 2  ;;  %vm132_vm10 = vcmp.eq.s32.totalorder %v130_v20, 0  ;;  %vm131_vm11 = vcmp.lt.s32.totalorder %v130_v20, 2 }
  0x38   :  { %v105_v61 = vclz %v194_v60 }
  0x3a   :  { %v195_v62 = vadd.s32 4294967294, %v105_v61 }
  0x3c   :  { %vm196_vm6 = vcmp.lt.s32.totalorder %v195_v62, 0 }
  0x3d   :  { %v108_v1 = vsel %vm196_vm6, 0, %v195_v62 }
  0x3e   :  { %v109_v2 = vsub.s32 32, %v108_v1  ;;  %v110_v4 = vshll.u32 %v101_v58, %v108_v1  ;;  %v113_v5 = vsub.s32 4294967266, %v108_v1 }
  0x40   :  { %v111_v6 = vshrl.u32 %v93_v63, %v109_v2  ;;  %v114_v7 = vadd.s32 127, %v113_v5 }
  0x42   :  { %v112_v8 = vor.u32 %v111_v6, %v110_v4  ;;  %v115_v9 = vshll.u32 %v114_v7, 23 }
  0x44   :  { %v116_v10 = vor.u32 4788187, %v115_v9  ;;  %v119_v11 = vcvt.s32.f32 %v112_v8 }
  0x46   :  { %v117_v12 = vand.u32 2147483647, %v116_v10 }
  0x48   :  { %v120_v13 = vmul.f32 %v119_v11, %v117_v12 }
  0x4a   :  { %v121_v14 = vxor.u32 2147483648, %v120_v13 }
  0x4c   :  { %v122_v15 = vsel %vm39_vm7, %v121_v14, %v120_v13 }
  0x4d   :  { %v125_v17 = vsel %vm38_vm8, %v284_v0, %v122_v15 }
  0x4e   :  { %213 = vcosq.f32 %v125_v17 }
  0x4f   :  { %215 = vsinq.f32 %v125_v17 }
  0x5b   :  { %v214_v21 = vpop.eup %213 }
  0x5c   :  { %v216_v25 = vpop.eup %215  ;;  %v136_v26 = vxor.u32 2147483648, %v214_v21 }
  0x5d   :  { %v133_v3 = vxor.u32 2147483648, %v216_v25 }
  0x5e   :  { %v137_v27 = vsel %vm135_vm9, %v136_v26, %v216_v25 }
  0x5f   :  { %v134_v30 = vsel %vm132_vm10, %v214_v21, %v133_v3 }
  0x60   :  { %v138_v31 = vsel %vm131_vm11, %v134_v30, %v137_v27 }
  0x61   :  { %v139_v33 = vsel %vm129_vm12, nan, %v138_v31 }
  0x62   :  { %v142_v35 = vsub.f32 1.0, %v139_v33  ;;  %v150_v42 = vmul.f32 %v149_v36, %v139_v33 }
  0x64   :  { %v143_v38 = vmul.f32 2.45091, %v142_v35 }
  0x66   :  { %v144_v41 = vadd.f32 %v143_v38, %v141_v34 }
  0x68   :  { %v147_v44 = vadd.f32 %v146_v39, %v144_v41 }
  0x6a   :  { %v151_v0 = vadd.f32 %v150_v42, %v147_v44 }
  0x6c   :  { %v154_v47 = vadd.f32 %v153_v45, %v151_v0 }
  0x6e   :  { %v157_v48 = vadd.f32 %v156_v46, %v154_v47 }
  0x70   :  { %165 = vadd.xlane.f32.xlu0 %v157_v48 }
  0xf9   :  { %v166_v49 = vpop.xlane.xlu0 %165 }
  0xfa   :  { %v167_v50 = vrot.slane %v166_v49, 4 }
  0xfc   :  { %v168_v51 = vadd.f32 %v167_v50, %v166_v49 }
  0xfe   :  { %v169_v52 = vrot.slane %v168_v51, 2 }
 0x100   :  { %v170_v53 = vadd.f32 %v169_v52, %v168_v51 }
 0x102   :  { %v171_v54 = vrot.slane %v170_v53, 1 }
 0x104   :  { %v172_v55 = vadd.f32 %v171_v54, %v170_v53 }
 0x106   :  { %201 = vpush %v172_v55 }
 0x137   :  { %s202_s14 = spop %201 }
 0x138   :  { %s174_s15 = smul.f32 0.125, %s202_s14 }
 0x13a   :  { %v175_v56 = vstv %s174_s15 }
 0x13b   :  { %177 = vst [vmem:[#allocation6] sm:$0xff] %v175_v56 }
 0x13c   :  { %248 = shalt.err (!%p245_p9)
}
 0x13d   :  { %187 = dma.vmem_to_hbm [thread:$0]  %s185_s13, 128, %s309_s1, [#allocation5]  }
 0x13e   :  { %259 = dma.done.wait [#allocation5], 128  }
 0x13f   :  { %260 = vsyncadd [#allocation5], 4294967168 }
 0x140   :  { %191 = vsyncpa [#allocation4], 1 }
 0x141   :  { %192 = vsyncpa [#allocation5], 1 }

</bundles_post_ra>
